<compile_context>
chip_gen: v5e
topology: v5e:2x2
jax: 0.10.0
libtpu: 0.0.40
codegen_flags: <defaults>
</compile_context>

<pallas_src>
import jax
import jax.numpy as jnp
from jax.experimental import pallas as pl
from jax.experimental.pallas import tpu as pltpu


_HIDDEN = 64
_SUBLANE = 8


def _round_up(x, m):
    return (x + m - 1) // m * m


def _cdiv(a, b):
    return -(-a // b)


def _mlp_kernel(x_ref, w1_ref, b1_ref, w2_ref, b2_ref, w3_ref, b3_ref, o_ref):
    x = x_ref[...]                                                  # (TB, D_in) f32

    # layer 1: Linear + ReLU  (f32 matmul, f32 accumulate)
    h1 = jnp.dot(x, w1_ref[...], preferred_element_type=jnp.float32)
    h1 = jnp.maximum(h1 + b1_ref[...], 0.0)                         # (TB, 64)

    # layer 2: Linear + ReLU
    h2 = jnp.dot(h1, w2_ref[...], preferred_element_type=jnp.float32)
    h2 = jnp.maximum(h2 + b2_ref[...], 0.0)                         # (TB, 64)

    # output layer: Linear + Identity output_activation
    out = jnp.dot(h2, w3_ref[...], preferred_element_type=jnp.float32)
    o_ref[...] = (out + b3_ref[...]).astype(o_ref.dtype)            # (TB, D_out)


def network_forward(x, params, *, batch_tile=2048):
    """Fused MLP forward pass.

    x: (B, input_dim) float32
    params: dict with w1 (D_in,64), b1 (1,64), w2 (64,64), b2 (1,64),
            w3 (64,D_out), b3 (1,D_out)  -- weights stored (in, out).
    """
    B, d_in = x.shape
    d_out = params["w3"].shape[1]

    # ---- batch tiling -------------------------------------------------------
    # Balanced tiles: pad waste < 8 rows. Keep >= 2 grid steps whenever there
    # is enough work, so both v7x TensorCores get a share and the x/out
    # double-buffering can actually overlap DMA with compute.
    n_steps = _cdiv(B, batch_tile)
    if n_steps < 2 and B >= 2 * _SUBLANE:
        n_steps = 2
    tb = _round_up(_cdiv(B, n_steps), _SUBLANE)
    b_pad = tb * n_steps

    x_p = x if b_pad == B else jnp.pad(x, ((0, b_pad - B), (0, 0)))

    # f32 weights/biases (kernel is not MXU-bound; f32 matmuls are free here
    # and keep near-exact parity with the torch reference).
    w1 = params["w1"].astype(jnp.float32)
    b1 = params["b1"].astype(jnp.float32)
    w2 = params["w2"].astype(jnp.float32)
    b2 = params["b2"].astype(jnp.float32)
    w3 = params["w3"].astype(jnp.float32)
    b3 = params["b3"].astype(jnp.float32)

    grid = (n_steps,)

    def resident(shape):
        # weights / biases: same block every grid step -> stays VMEM-resident
        return pl.BlockSpec(shape, lambda i: (0, 0))

    flops = 2 * b_pad * (d_in * _HIDDEN + _HIDDEN * _HIDDEN + _HIDDEN * d_out)
    bytes_accessed = (
        x_p.size * 4
        + (w1.size + w2.size + w3.size) * 4
        + (b1.size + b2.size + b3.size) * 4
        + b_pad * d_out * 4
    )

    out = pl.pallas_call(
        _mlp_kernel,
        out_shape=jax.ShapeDtypeStruct((b_pad, d_out), jnp.float32),
        grid=grid,
        in_specs=[
            pl.BlockSpec((tb, d_in), lambda i: (i, 0)),   # x: tiled over batch
            resident(w1.shape), resident(b1.shape),
            resident(w2.shape), resident(b2.shape),
            resident(w3.shape), resident(b3.shape),
        ],
        # minor dim == full array dim (d_out) is legal; no 128-lane padding.
        out_specs=pl.BlockSpec((tb, d_out), lambda i: (i, 0)),
        compiler_params=pltpu.CompilerParams(
            dimension_semantics=("parallel",)),            # 2 TCs on v7x
        cost_estimate=pl.CostEstimate(
            flops=flops, transcendentals=0, bytes_accessed=bytes_accessed),
    )(x_p, w1, b1, w2, b2, w3, b3)

    return out[:B]


def init_network_params(key, input_dimension, output_dimension, hidden=_HIDDEN):
    """Deterministic init mimicking torch.nn.Linear default (U(-1/sqrt(fan_in), +))."""
    ks = jax.random.split(key, 6)

    def linear(kw, kb, fan_in, fan_out):
        bound = 1.0 / jnp.sqrt(fan_in)
        w = jax.random.uniform(kw, (fan_in, fan_out), jnp.float32, -bound, bound)
        b = jax.random.uniform(kb, (1, fan_out), jnp.float32, -bound, bound)
        return w, b

    w1, b1 = linear(ks[0], ks[1], input_dimension, hidden)
    w2, b2 = linear(ks[2], ks[3], hidden, hidden)
    w3, b3 = linear(ks[4], ks[5], hidden, output_dimension)
    return {"w1": w1, "b1": b1, "w2": w2, "b2": b2, "w3": w3, "b3": b3}


def network_forward_ref(x, p):
    """Plain-JAX f32 reference for correctness checking."""
    h1 = jnp.maximum(x @ p["w1"] + p["b1"], 0.0)
    h2 = jnp.maximum(h1 @ p["w2"] + p["b2"], 0.0)
    return h2 @ p["w3"] + p["b3"]


if __name__ == "__main__":
    key = jax.random.PRNGKey(0)
    k_x, k_p = jax.random.split(key)

    batch = 2
    input_dimension = 8     # e.g. state dimension
    output_dimension = 4    # e.g. action / Q-value output dimension

    x = jax.random.normal(k_x, (batch, input_dimension), jnp.float32)
    params = init_network_params(k_p, input_dimension, output_dimension)

    out = network_forward(x, params)
    out = jax.block_until_ready(out)

    ref = network_forward_ref(x, params)
    assert out.shape == (batch, output_dimension)
    # All-f32 path -> tight tolerance against the f32 reference.
    assert jnp.allclose(out, ref, atol=1e-5, rtol=1e-5), (out, ref)

    print("KERNEL_OK")
</pallas_src>

<mosaic_0001>
module attributes {stable_mosaic.version = 11 : i64} {
  func.func @_mlp_kernel(%arg0: i32, %arg1: memref<8x8xf32, #tpu.memory_space<vmem>>, %arg2: memref<8x64xf32, #tpu.memory_space<vmem>>, %arg3: memref<1x64xf32, #tpu.memory_space<vmem>>, %arg4: memref<64x64xf32, #tpu.memory_space<vmem>>, %arg5: memref<1x64xf32, #tpu.memory_space<vmem>>, %arg6: memref<64x4xf32, #tpu.memory_space<vmem>>, %arg7: memref<1x4xf32, #tpu.memory_space<vmem>>, %arg8: memref<8x4xf32, #tpu.memory_space<vmem>>) attributes {dimension_semantics = [#tpu.dimension_semantics<parallel>], iteration_bounds = array<i64: 1>, scalar_prefetch = 0 : i64, scratch_operands = 0 : i64, tpu.core_type = #tpu.core_type<tc>, window_params = [{transform_indices = @transform_0, window_bounds = array<i64: 8, 8>}, {pipeline_mode = #tpu.pipeline_mode<synchronous>, transform_indices = @transform_1, window_bounds = array<i64: 8, 64>}, {pipeline_mode = #tpu.pipeline_mode<synchronous>, transform_indices = @transform_2, window_bounds = array<i64: 1, 64>}, {pipeline_mode = #tpu.pipeline_mode<synchronous>, transform_indices = @transform_3, window_bounds = array<i64: 64, 64>}, {pipeline_mode = #tpu.pipeline_mode<synchronous>, transform_indices = @transform_4, window_bounds = array<i64: 1, 64>}, {pipeline_mode = #tpu.pipeline_mode<synchronous>, transform_indices = @transform_5, window_bounds = array<i64: 64, 4>}, {pipeline_mode = #tpu.pipeline_mode<synchronous>, transform_indices = @transform_6, window_bounds = array<i64: 1, 4>}, {transform_indices = @transform_7, window_bounds = array<i64: 8, 4>}]} {
    %c0 = arith.constant 0 : index
    %c0_0 = arith.constant 0 : index
    %0 = vector.load %arg1[%c0, %c0_0] : memref<8x8xf32, #tpu.memory_space<vmem>>, vector<8x8xf32>
    %c0_1 = arith.constant 0 : index
    %c0_2 = arith.constant 0 : index
    %1 = vector.load %arg2[%c0_1, %c0_2] : memref<8x64xf32, #tpu.memory_space<vmem>>, vector<8x64xf32>
    %cst = arith.constant dense<0.000000e+00> : vector<8x64xf32>
    %2 = tpu.matmul %0, %1, %cst {dimension_numbers = #tpu.dot_dimension_numbers<[1], [0], [0], [1], [0, 0, 1, 1], [], []>} : vector<8x8xf32>, vector<8x64xf32>, vector<8x64xf32> -> vector<8x64xf32>
    %c0_3 = arith.constant 0 : index
    %c0_4 = arith.constant 0 : index
    %3 = vector.load %arg3[%c0_3, %c0_4] : memref<1x64xf32, #tpu.memory_space<vmem>>, vector<1x64xf32>
    %4 = vector.broadcast %3 : vector<1x64xf32> to vector<8x64xf32>
    %5 = arith.addf %2, %4 : vector<8x64xf32>
    %cst_5 = arith.constant 0.000000e+00 : f32
    %6 = vector.broadcast %cst_5 : f32 to vector<8x64xf32>
    %7 = arith.maximumf %5, %6 : vector<8x64xf32>
    %c0_6 = arith.constant 0 : index
    %c0_7 = arith.constant 0 : index
    %8 = vector.load %arg4[%c0_6, %c0_7] : memref<64x64xf32, #tpu.memory_space<vmem>>, vector<64x64xf32>
    %cst_8 = arith.constant dense<0.000000e+00> : vector<8x64xf32>
    %9 = tpu.matmul %7, %8, %cst_8 {dimension_numbers = #tpu.dot_dimension_numbers<[1], [0], [0], [1], [0, 0, 1, 1], [], []>} : vector<8x64xf32>, vector<64x64xf32>, vector<8x64xf32> -> vector<8x64xf32>
    %c0_9 = arith.constant 0 : index
    %c0_10 = arith.constant 0 : index
    %10 = vector.load %arg5[%c0_9, %c0_10] : memref<1x64xf32, #tpu.memory_space<vmem>>, vector<1x64xf32>
    %11 = vector.broadcast %10 : vector<1x64xf32> to vector<8x64xf32>
    %12 = arith.addf %9, %11 : vector<8x64xf32>
    %cst_11 = arith.constant 0.000000e+00 : f32
    %13 = vector.broadcast %cst_11 : f32 to vector<8x64xf32>
    %14 = arith.maximumf %12, %13 : vector<8x64xf32>
    %c0_12 = arith.constant 0 : index
    %c0_13 = arith.constant 0 : index
    %15 = vector.load %arg6[%c0_12, %c0_13] : memref<64x4xf32, #tpu.memory_space<vmem>>, vector<64x4xf32>
    %cst_14 = arith.constant dense<0.000000e+00> : vector<8x4xf32>
    %16 = tpu.matmul %14, %15, %cst_14 {dimension_numbers = #tpu.dot_dimension_numbers<[1], [0], [0], [1], [0, 0, 1, 1], [], []>} : vector<8x64xf32>, vector<64x4xf32>, vector<8x4xf32> -> vector<8x4xf32>
    %c0_15 = arith.constant 0 : index
    %c0_16 = arith.constant 0 : index
    %17 = vector.load %arg7[%c0_15, %c0_16] : memref<1x4xf32, #tpu.memory_space<vmem>>, vector<1x4xf32>
    %18 = vector.broadcast %17 : vector<1x4xf32> to vector<8x4xf32>
    %19 = arith.addf %16, %18 : vector<8x4xf32>
    %c0_17 = arith.constant 0 : index
    %c0_18 = arith.constant 0 : index
    %20 = vector.load %arg8[%c0_17, %c0_18] : memref<8x4xf32, #tpu.memory_space<vmem>>, vector<8x4xf32>
    tpu.vector_store %arg8[%c0_17, %c0_18], %19 {strides = array<i32>} : memref<8x4xf32, #tpu.memory_space<vmem>>, vector<8x4xf32>,
    return
  }
  func.func @transform_0(%arg0: i32) -> (i32, i32) {
    %c0_i32 = arith.constant 0 : i32
    %c0_i32_0 = arith.constant 0 : i32
    return %arg0, %c0_i32 : i32, i32
  }
  func.func @transform_1(%arg0: i32) -> (i32, i32) {
    %c0_i32 = arith.constant 0 : i32
    %c0_i32_0 = arith.constant 0 : i32
    %c0_i32_1 = arith.constant 0 : i32
    return %c0_i32, %c0_i32_0 : i32, i32
  }
  func.func @transform_2(%arg0: i32) -> (i32, i32) {
    %c0_i32 = arith.constant 0 : i32
    %c0_i32_0 = arith.constant 0 : i32
    %c0_i32_1 = arith.constant 0 : i32
    return %c0_i32, %c0_i32_0 : i32, i32
  }
  func.func @transform_3(%arg0: i32) -> (i32, i32) {
    %c0_i32 = arith.constant 0 : i32
    %c0_i32_0 = arith.constant 0 : i32
    %c0_i32_1 = arith.constant 0 : i32
    return %c0_i32, %c0_i32_0 : i32, i32
  }
  func.func @transform_4(%arg0: i32) -> (i32, i32) {
    %c0_i32 = arith.constant 0 : i32
    %c0_i32_0 = arith.constant 0 : i32
    %c0_i32_1 = arith.constant 0 : i32
    return %c0_i32, %c0_i32_0 : i32, i32
  }
  func.func @transform_5(%arg0: i32) -> (i32, i32) {
    %c0_i32 = arith.constant 0 : i32
    %c0_i32_0 = arith.constant 0 : i32
    %c0_i32_1 = arith.constant 0 : i32
    return %c0_i32, %c0_i32_0 : i32, i32
  }
  func.func @transform_6(%arg0: i32) -> (i32, i32) {
    %c0_i32 = arith.constant 0 : i32
    %c0_i32_0 = arith.constant 0 : i32
    %c0_i32_1 = arith.constant 0 : i32
    return %c0_i32, %c0_i32_0 : i32, i32
  }
  func.func @transform_7(%arg0: i32) -> (i32, i32) {
    %c0_i32 = arith.constant 0 : i32
    %c0_i32_0 = arith.constant 0 : i32
    return %arg0, %c0_i32 : i32, i32
  }
}

</mosaic_0001>

<bundles_post_ra>
// kernel: tpu_custom_call.1
= control target key start
LH: loop header
LB: loop body
LE: loop exit
PB: predicated region body
PF: predicated region fallthrough
CT: control target
= control target key end

     0   :  { %12 = vsyncpa [#allocation3], 0  ;;  %s333_s0 = inlined_call_operand.hbm [shape: f32[8,8], index: 0, kind: input, shape index: {}]   ;;  %s334_s1 = inlined_call_operand.hbm [shape: f32[8,64], index: 1, kind: input, shape index: {}]   ;;  %s335_s2 = inlined_call_operand.vmem [shape: f32[1,64], index: 2, kind: input, shape index: {}]   ;;  %s336_s3 = inlined_call_operand.vmem [shape: f32[64,64], index: 3, kind: input, shape index: {}]   ;;  %s337_s4 = inlined_call_operand.vmem [shape: f32[1,64], index: 4, kind: input, shape index: {}]   ;;  %s338_s5 = inlined_call_operand.vmem [shape: f32[64,4], index: 5, kind: input, shape index: {}]   ;;  %s339_s6 = inlined_call_operand.vmem [shape: f32[1,4], index: 6, kind: input, shape index: {}]   ;;  %s340_s7 = inlined_call_operand.vmem [shape: f32[8,4], index: 7, kind: output, shape index: {}]  }
   0x1   :  { %s19_s26 = sshll.u32 %s333_s0, 4  ;;  %s20_s26 = int_to_ptr.hbm [resolvable:$true] %s19_s26 }
   0x2   :  { %13 = vsyncpa [#allocation5], 0  ;;  %s225_s27 = smov [#allocation2]   ;;  %s30_s8 = sshll.u32 %s334_s1, 4  ;;  %s31_s8 = int_to_ptr.hbm [resolvable:$true] %s30_s8 }
   0x3   :  { %s21_s28 = sshll.u32 %s225_s27, 4  ;;  %s226_s9 = smov [#allocation4]   ;;  %s22_s28 = int_to_ptr.vmem [resolvable:$true] %s21_s28 }
   0x4   :  { %24 = dma.hbm_to_vmem [thread:$0]  %s20_s26, 128, %s22_s28, [#allocation3]  }
   0x5   :  { %s32_s10 = sshll.u32 %s226_s9, 4  ;;  %s33_s10 = int_to_ptr.vmem [resolvable:$true] %s32_s10 }
   0x6   :  { %35 = dma.hbm_to_vmem [thread:$0]  %s31_s8, 128, %s33_s10, [#allocation5]  }
   0x7   :  { %221 = dma.done.wait [#allocation3], 128  }
   0x8   :  { %222 = vsyncadd [#allocation3], 4294967168 }
   0x9   :  { %223 = dma.done.wait [#allocation5], 128  }
   0xa   :  { %224 = vsyncadd [#allocation5], 4294967168  ;;  %vm60_vm0 = vcmask 64512   ;;  %v55_v0 = vld [vmem:[#allocation4] sm:$0xff]  ;;  %v54_v1 = vld [vmem:[#allocation2] sm:$0xff]  ;;  %vm97_vm1 = vcmask 523264  }
   0xb   :  { %v92_v2 = vld [vmem:[%s336_s3 + $0x38] sm:$0xff]  ;;  %79 = vmatpush.msra.mxu0 %v55_v0  ;;  %v91_v3 = vld [vmem:[%s336_s3 + $0x30] sm:$0xff]  ;;  %v90_v4 = vld [vmem:[%s336_s3 + $0x28] sm:$0xff]  ;;  %vm157_vm2 = vcmask 31744  }
   0xc   :  { %109 = vmatpush.msra.mxu1 %v92_v2  ;;  %165 = vmatmul.msk.f32.vlgmr.msra.gmra.mxu0 %vm60_vm0, %v54_v1  ;;  %v89_v5 = vld [vmem:[%s336_s3 + $0x20] sm:$0xff]  ;;  %v88_v6 = vld [vmem:[%s336_s3 + $0x18] sm:$0xff]  ;;  %v87_v7 = vld [vmem:[%s336_s3 + $0x10] sm:$0xff] }
   0xd   :  { %v86_v8 = vld [vmem:[%s336_s3 + $0x8] sm:$0xff]  ;;  %v85_v9 = vld [vmem:[%s336_s3] sm:$0xff]  ;;  %v129_v10 = vld [vmem:[%s338_s5 + $0x38] sm:$0xff] }
   0xe   :  { %110 = vmatpush.msra.mxu1 %v91_v3  ;;  %v128_v11 = vld [vmem:[%s338_s5 + $0x30] sm:$0xff]  ;;  %145 = vmatpush.msra.mxu2 %v129_v10  ;;  %v127_v12 = vld [vmem:[%s338_s5 + $0x28] sm:$0xff]  ;;  %v126_v13 = vld [vmem:[%s338_s5 + $0x20] sm:$0xff] }
   0xf   :  { %v125_v14 = vld [vmem:[%s338_s5 + $0x18] sm:$0xff]  ;;  %v170_v15 = vld [vmem:[%s335_s2] ss:$0 sm:$0xff]  ;;  %v124_v19 = vld [vmem:[%s338_s5 + $0x10] sm:$0xff] }
  0x10   :  { %111 = vmatpush.msra.mxu1 %v90_v4  ;;  %146 = vmatpush.msra.mxu2 %v128_v11  ;;  %v123_v20 = vld [vmem:[%s338_s5 + $0x8] sm:$0xff]  ;;  %v122_v21 = vld [vmem:[%s338_s5] sm:$0xff] }
  0x11   :  { %v171_v22 = vld [vmem:[%s337_s4] ss:$0 sm:$0xff] }
  0x12   :  { %112 = vmatpush.msra.mxu1 %v89_v5  ;;  %147 = vmatpush.msra.mxu2 %v127_v12  ;;  %v172_v26 = vld [vmem:[%s339_s6] ss:$0 sm:$0xff] }
  0x14   :  { %113 = vmatpush.msra.mxu1 %v88_v6  ;;  %148 = vmatpush.msra.mxu2 %v126_v13 }
  0x16   :  { %114 = vmatpush.msra.mxu1 %v87_v7  ;;  %149 = vmatpush.msra.mxu2 %v125_v14 }
  0x18   :  { %115 = vmatpush.msra.mxu1 %v86_v8  ;;  %150 = vmatpush.msra.mxu2 %v124_v19 }
  0x1a   :  { %116 = vmatpush.msra.mxu1 %v85_v9  ;;  %151 = vmatpush.msra.mxu2 %v123_v20 }
  0x1c   :  { %152 = vmatpush.msra.mxu2 %v122_v21 }
  0x89   :  { %v81_v16 = vpop.f32.mrf.mxu0 }
  0x8a   :  { %v82_v17 = vadd.f32 %v170_v15, %v81_v16 }
  0x8c   :  { %v84_v18 = vmax.f32 %v82_v17, 0.0 }
  0x8e   :  { %166 = vmatmul.msk.f32.vlgmr.msra.gmra.mxu1 %vm97_vm1, %v84_v18 }
 0x10b   :  { %v118_v23 = vpop.f32.mrf.mxu1 }
 0x10c   :  { %v119_v24 = vadd.f32 %v171_v22, %v118_v23 }
 0x10e   :  { %v121_v25 = vmax.f32 %v119_v24, 0.0 }
 0x110   :  { %167 = vmatmul.msk.f32.vlgmr.msra.gmra.mxu2 %vm97_vm1, %v121_v25 }
 0x193   :  { %v154_v27 = vpop.f32.mrf.mxu2 }
 0x194   :  { %v155_v28 = vadd.f32 %v172_v26, %v154_v27 }
 0x196   :  { %158 = vst.msk [vmem:[%s340_s7] sm:$0xff] %vm157_vm2, %v155_v28 }
 0x197   :  { %163 = vsyncpa [#allocation3], 1 }
 0x198   :  { %164 = vsyncpa [#allocation5], 1 }

</bundles_post_ra>
